<compile_context>
chip_gen: v5e
topology: v5e:2x2
jax: 0.10.0
libtpu: 0.0.40
codegen_flags: <defaults>
</compile_context>

<pallas_src>
import functools

import jax
import jax.numpy as jnp
from jax.experimental import pallas as pl
from jax.experimental.pallas import tpu as pltpu


def _round_up(x, m):
    return ((x + m - 1) // m) * m


def _vmem_capacity_bytes():
    """Physical per-core VMEM (generation-aware), with a safe fallback."""
    try:
        info = pltpu.get_tpu_info()
        cap = getattr(info, "vmem_capacity_bytes", None)
        if cap:
            return int(cap)
    except Exception:  # not a TPU backend / older jax
        pass
    return 64 * 1024 * 1024  # v7x-sized fallback: safe on every generation


def _pick_tile_n(n, d, itemsize, row_align, budget_bytes):
    """Pick the batch tile minimizing streamed-bytes + per-step overhead,
    subject to a VMEM budget (double-buffered x0/x1 + lane-padded y tile)."""
    d_lanes = _round_up(d, 128)            # VMEM lane padding of the x blocks
    n_aligned = _round_up(n, row_align)

    def fits(tile, nbuf=2):
        x_bytes = 2 * nbuf * tile * d_lanes * itemsize   # x0 + x1, pipelined
        y_bytes = nbuf * tile * 128 * 4                  # (tile,1) f32 lane-padded
        return x_bytes + y_bytes <= budget_bytes

    # Candidates: power-of-two multiples of row_align, plus aligned near-
    # divisors of N so awkward batch sizes don't pad (and stream) ~2x.
    cands = set()
    c = row_align
    while c <= n_aligned:
        cands.add(c)
        c *= 2
    for k in (1, 2, 3, 4, 5, 6, 7, 8, 12, 16, 24, 32, 48, 64, 96, 128):
        t = _round_up(-(-n_aligned // k), row_align)
        if t >= row_align:
            cands.add(t)
    cands.add(row_align)

    # ~0.35-0.5us/step pipeline overhead expressed in "equivalent HBM bytes"
    # (~1.2 TB/s); only the relative ranking between candidates matters.
    per_step_overhead_bytes = 600_000
    best, best_cost = None, None
    for t in sorted(cands):
        if not fits(t):
            continue
        n_pad = _round_up(n, t)
        steps = n_pad // t
        cost = 2 * n_pad * d * itemsize + steps * per_step_overhead_bytes
        if best is None or cost < best_cost:
            best, best_cost = t, cost
    if best is None:
        # Extremely wide D: even the minimal tile busts the budget; rely on the
        # vmem_limit headroom.
        # TODO(synk): also tile the feature dim D for extremely wide inputs.
        best = row_align
    return best


def _contrastive_loss_kernel(x0_ref, x1_ref, y_ref, out_ref, *, margin):
    x0 = x0_ref[...].astype(jnp.float32)          # (TILE_N, D)
    x1 = x1_ref[...].astype(jnp.float32)          # (TILE_N, D)
    y = y_ref[...].astype(jnp.float32)            # (TILE_N, 1)

    diff = x0 - x1                                               # VPU
    dist_sq = jnp.sum(diff * diff, axis=1, keepdims=True)        # XLU lane reduce
    dist = jnp.sqrt(dist_sq)                                     # EUP
    clamped = jnp.maximum(margin - dist, 0.0)
    loss_rows = y * dist_sq + (1.0 - y) * (clamped * clamped)    # (TILE_N, 1)

    partial = jnp.sum(loss_rows)                                 # per-tile scalar
    # Disjoint lane/sublane-aligned (1, 8, 128) output block per grid step:
    # unmasked stores, and the grid axis stays truly parallel (dual-TC on v7x).
    out_ref[...] = jnp.broadcast_to(partial, out_ref.shape)


def contrastive_loss(x0, x1, y, margin=1.0, tile_n=None):
    """Pallas TPU contrastive loss.

    x0, x1: (N, D) float arrays (f32 or bf16)
    y:      (N,)   labels (1 = similar pair, 0 = dissimilar)
    returns scalar float32 loss
    """
    # Mirrors check_type_forward
    assert x0.ndim == 2 and x1.ndim == 2 and y.ndim == 1
    assert x0.shape == x1.shape
    assert x1.shape[0] == y.shape[0] and x1.shape[0] > 0

    n, d = x0.shape
    itemsize = jnp.dtype(x0.dtype).itemsize
    # Sublane packing granularity: 8 rows (f32), 16 (bf16), 32 (int8/fp8).
    row_align = max(8, 32 // max(1, itemsize))

    cap = _vmem_capacity_bytes()
    vmem_limit = min(int(cap * 0.75), 100 * 1024 * 1024)   # ~96 MiB v5e/v6e, ~48 MiB v7x
    tile_budget = max(vmem_limit - (4 << 20), 4 << 20)     # headroom for y/out/misc

    if tile_n is None:
        tile_n = _pick_tile_n(n, d, itemsize, row_align, tile_budget)
    else:
        tile_n = _round_up(int(tile_n), row_align)

    n_pad = _round_up(n, tile_n)
    y2d = y.reshape(n, 1).astype(jnp.float32)
    if n_pad != n:
        pad = n_pad - n
        # Pad rows with x0 == x1 == 0 and y == 1: contribution is exactly 0.
        x0 = jnp.pad(x0, ((0, pad), (0, 0)))
        x1 = jnp.pad(x1, ((0, pad), (0, 0)))
        y2d = jnp.pad(y2d, ((0, pad), (0, 0)), constant_values=1.0)

    num_tiles = n_pad // tile_n

    kernel = functools.partial(_contrastive_loss_kernel, margin=float(margin))

    cost = pl.CostEstimate(
        flops=int(3 * n * d + 8 * n),
        transcendentals=int(n),
        bytes_accessed=int(2 * n_pad * d * itemsize + n_pad * 4
                           + num_tiles * 8 * 128 * 4),
    )

    partials = pl.pallas_call(
        kernel,
        out_shape=jax.ShapeDtypeStruct((num_tiles, 8, 128), jnp.float32),
        grid_spec=pltpu.PrefetchScalarGridSpec(
            num_scalar_prefetch=0,
            grid=(num_tiles,),
            in_specs=[
                pl.BlockSpec((tile_n, d), lambda i: (i, 0)),
                pl.BlockSpec((tile_n, d), lambda i: (i, 0)),
                pl.BlockSpec((tile_n, 1), lambda i: (i, 0)),
            ],
            out_specs=pl.BlockSpec((1, 8, 128), lambda i: (i, 0, 0)),
        ),
        compiler_params=pltpu.CompilerParams(
            dimension_semantics=("parallel",),        # per-tile disjoint outputs
            vmem_limit_bytes=int(vmem_limit),
        ),
        cost_estimate=cost,
    )(x0, x1, y2d)

    # Tiny final reduction over the per-tile partial sums (one scalar per tile).
    return jnp.sum(partials[:, 0, 0]) / (2.0 * n)


def _reference_loss(x0, x1, y, margin=1.0):
    diff = x0 - x1
    dist_sq = jnp.sum(diff**2, axis=1)
    dist = jnp.sqrt(dist_sq)
    mdist = margin - dist
    dist_c = jnp.maximum(mdist, 0.0)
    loss = y * dist_sq + (1.0 - y) * dist_c**2
    return jnp.sum(loss) / 2.0 / x0.shape[0]


if __name__ == "__main__":
    key = jax.random.PRNGKey(0)
    k0, k1, k2 = jax.random.split(key, 3)

    # Small shape consistent with the module's 2-D (N, D) contract.
    N, D = 8, 32
    x0 = jax.random.normal(k0, (N, D), dtype=jnp.float32)
    x1 = jax.random.normal(k1, (N, D), dtype=jnp.float32)
    y = jax.random.bernoulli(k2, 0.5, (N,)).astype(jnp.float32)

    loss = jax.block_until_ready(contrastive_loss(x0, x1, y, margin=1.0))
    ref = _reference_loss(x0, x1, y, margin=1.0)
    assert jnp.allclose(loss, ref, rtol=1e-5, atol=1e-5), (loss, ref)

    # Awkward N + bf16: padding-free single-tile selection + in-kernel f32 upcast.
    N2, D2 = 1040, 128
    k3, k4, k5 = jax.random.split(k2, 3)
    a0 = jax.random.normal(k3, (N2, D2), dtype=jnp.bfloat16)
    a1 = jax.random.normal(k4, (N2, D2), dtype=jnp.bfloat16)
    yl = jax.random.bernoulli(k5, 0.5, (N2,)).astype(jnp.float32)
    loss2 = jax.block_until_ready(contrastive_loss(a0, a1, yl, margin=1.0))
    ref2 = _reference_loss(a0.astype(jnp.float32), a1.astype(jnp.float32), yl)
    assert jnp.allclose(loss2, ref2, rtol=1e-3, atol=1e-3), (loss2, ref2)

    # Forced small tile: exercises the multi-step parallel grid + row padding.
    loss3 = jax.block_until_ready(
        contrastive_loss(a0, a1, yl, margin=1.0, tile_n=128))
    assert jnp.allclose(loss3, ref2, rtol=1e-3, atol=1e-3), (loss3, ref2)

    print("KERNEL_OK")
</pallas_src>

<mosaic_0001>
module attributes {stable_mosaic.version = 11 : i64} {
  func.func @_contrastive_loss_kernel(%arg0: i32, %arg1: memref<8x32xf32, #tpu.memory_space<vmem>>, %arg2: memref<8x32xf32, #tpu.memory_space<vmem>>, %arg3: memref<8x1xf32, #tpu.memory_space<vmem>>, %arg4: memref<1x8x128xf32, #tpu.memory_space<vmem>>) attributes {dimension_semantics = [#tpu.dimension_semantics<parallel>], iteration_bounds = array<i64: 1>, scalar_prefetch = 0 : i64, scratch_operands = 0 : i64, tpu.core_type = #tpu.core_type<tc>, window_params = [{transform_indices = @transform_0, window_bounds = array<i64: 8, 32>}, {transform_indices = @transform_1, window_bounds = array<i64: 8, 32>}, {transform_indices = @transform_2, window_bounds = array<i64: 8, 1>}, {transform_indices = @transform_3, window_bounds = array<i64: 1, 8, 128>}]} {
    %c0 = arith.constant 0 : index
    %c0_0 = arith.constant 0 : index
    %0 = vector.load %arg1[%c0, %c0_0] : memref<8x32xf32, #tpu.memory_space<vmem>>, vector<8x32xf32>
    %c0_1 = arith.constant 0 : index
    %c0_2 = arith.constant 0 : index
    %1 = vector.load %arg2[%c0_1, %c0_2] : memref<8x32xf32, #tpu.memory_space<vmem>>, vector<8x32xf32>
    %c0_3 = arith.constant 0 : index
    %c0_4 = arith.constant 0 : index
    %2 = vector.load %arg3[%c0_3, %c0_4] : memref<8x1xf32, #tpu.memory_space<vmem>>, vector<8x1xf32>
    %3 = arith.subf %0, %1 : vector<8x32xf32>
    %4 = arith.mulf %3, %3 : vector<8x32xf32>
    %cst = arith.constant dense<0.000000e+00> : vector<8xf32>
    %5 = vector.multi_reduction <add>, %4, %cst [1] : vector<8x32xf32> to vector<8xf32>
    %6 = vector.shape_cast %5 : vector<8xf32> to vector<8x1xf32>
    %7 = math.sqrt %6 : vector<8x1xf32>
    %cst_5 = arith.constant 1.000000e+00 : f32
    %8 = vector.broadcast %cst_5 : f32 to vector<8x1xf32>
    %9 = arith.subf %8, %7 : vector<8x1xf32>
    %cst_6 = arith.constant 0.000000e+00 : f32
    %10 = vector.broadcast %cst_6 : f32 to vector<8x1xf32>
    %11 = arith.maximumf %9, %10 : vector<8x1xf32>
    %12 = arith.mulf %2, %6 : vector<8x1xf32>
    %cst_7 = arith.constant 1.000000e+00 : f32
    %13 = vector.broadcast %cst_7 : f32 to vector<8x1xf32>
    %14 = arith.subf %13, %2 : vector<8x1xf32>
    %15 = arith.mulf %11, %11 : vector<8x1xf32>
    %16 = arith.mulf %14, %15 : vector<8x1xf32>
    %17 = arith.addf %12, %16 : vector<8x1xf32>
    %18 = vector.shape_cast %17 : vector<8x1xf32> to vector<1x8x1xf32>
    %cst_8 = arith.constant dense<0.000000e+00> : vector<1xf32>
    %19 = vector.multi_reduction <add>, %18, %cst_8 [1, 2] : vector<1x8x1xf32> to vector<1xf32>
    %20 = vector.shape_cast %19 : vector<1xf32> to vector<1x1x1xf32>
    %21 = vector.extract %20[0, 0, 0] : f32 from vector<1x1x1xf32>
    %22 = vector.broadcast %21 : f32 to vector<1x8x128xf32>
    %c0_9 = arith.constant 0 : index
    %c0_10 = arith.constant 0 : index
    %c0_11 = arith.constant 0 : index
    %23 = vector.load %arg4[%c0_9, %c0_10, %c0_11] : memref<1x8x128xf32, #tpu.memory_space<vmem>>, vector<1x8x128xf32>
    tpu.vector_store %arg4[%c0_9, %c0_10, %c0_11], %22 {strides = array<i32>} : memref<1x8x128xf32, #tpu.memory_space<vmem>>, vector<1x8x128xf32>,
    return
  }
  func.func @transform_0(%arg0: i32) -> (i32, i32) {
    %c0_i32 = arith.constant 0 : i32
    %c0_i32_0 = arith.constant 0 : i32
    return %arg0, %c0_i32 : i32, i32
  }
  func.func @transform_1(%arg0: i32) -> (i32, i32) {
    %c0_i32 = arith.constant 0 : i32
    %c0_i32_0 = arith.constant 0 : i32
    return %arg0, %c0_i32 : i32, i32
  }
  func.func @transform_2(%arg0: i32) -> (i32, i32) {
    %c0_i32 = arith.constant 0 : i32
    %c0_i32_0 = arith.constant 0 : i32
    return %arg0, %c0_i32 : i32, i32
  }
  func.func @transform_3(%arg0: i32) -> (i32, i32, i32) {
    %c0_i32 = arith.constant 0 : i32
    %c0_i32_0 = arith.constant 0 : i32
    %c0_i32_1 = arith.constant 0 : i32
    return %arg0, %c0_i32, %c0_i32_0 : i32, i32, i32
  }
}

</mosaic_0001>

<bundles_post_ra>
// kernel: tpu_custom_call.1
= control target key start
LH: loop header
LB: loop body
LE: loop exit
PB: predicated region body
PF: predicated region fallthrough
CT: control target
= control target key end

     0   :  { %8 = vsyncpa [#allocation3], 0  ;;  %s179_s0 = inlined_call_operand.vmem [shape: f32[8,32], index: 0, kind: input, shape index: {}]   ;;  %s180_s1 = inlined_call_operand.hbm [shape: f32[8,32], index: 1, kind: input, shape index: {}]   ;;  %s181_s2 = inlined_call_operand.vmem [shape: f32[8,1], index: 2, kind: input, shape index: {}]   ;;  %s182_s3 = inlined_call_operand.hbm [shape: f32[1,8,128], index: 3, kind: output, shape index: {}]  }
   0x1   :  { %9 = vsyncpa [#allocation4], 0  ;;  %s17_s14 = sshll.u32 %s180_s1, 4  ;;  %s145_s15 = smov [#allocation2]   ;;  %s18_s14 = int_to_ptr.hbm [resolvable:$true] %s17_s14 }
   0x2   :  { %s19_s16 = sshll.u32 %s145_s15, 4  ;;  %s20_s16 = int_to_ptr.vmem [resolvable:$true] %s19_s16 }
   0x3   :  { %22 = dma.hbm_to_vmem [thread:$0]  %s18_s14, 128, %s20_s16, [#allocation3]  }
   0x4   :  { %141 = dma.done.wait [#allocation3], 128  }
   0x5   :  { %142 = vsyncadd [#allocation3], 4294967168  ;;  %v29_v0 = vld [vmem:[%s179_s0] sm:$0xff]  ;;  %vm34_vm0 = vcmask 261120   ;;  %vm57_vm3 = vcmask 7168   ;;  %s146_s19 = smov [#allocation5]  }
   0x6   :  { %v30_v1 = vld [vmem:[#allocation2] sm:$0xff]  ;;  %s75_s20 = sshll.u32 %s146_s19, 4  ;;  %s77_s22 = sshll.u32 %s182_s3, 4  ;;  %s76_s20 = int_to_ptr.vmem [resolvable:$true] %s75_s20  ;;  %s78_s22 = int_to_ptr.hbm [resolvable:$true] %s77_s22 }
   0x7   :  { %v32_v2 = vsub.f32 %v29_v0, %v30_v1  ;;  %v31_v17 = vld [vmem:[%s181_s2] sm:$0xff] }
   0x8   :  { %v53_v19 = vsub.f32 1.0, %v31_v17 }
   0x9   :  { %v33_v3 = vmul.f32 %v32_v2, %v32_v2 }
   0xb   :  { %v35_v4 = vsel %vm34_vm0, %v33_v3, 0.0 }
   0xc   :  { %36 = vadd.xlane.f32.xlu0 %v35_v4 }
  0x7f   :  { %v37_v5 = vpop.xlane.xlu0 %36 }
  0x80   :  { %91 = vrsqrt.f32 %v37_v5  ;;  %vm45_vm1 = vcmp.eq.f32.partialorder %v37_v5, inf  ;;  %v48_v13 = vand.u32 2147483648, %v37_v5  ;;  %vm47_vm2 = vcmp.eq.f32.partialorder %v37_v5, 0.0 }
  0x81   :  { %v52_v21 = vmul.f32 %v37_v5, %v31_v17 }
  0x86   :  { %v92_v6 = vpop.eup %91 }
  0x87   :  { %v39_v7 = vmul.f32 %v92_v6, %v37_v5 }
  0x89   :  { %v40_v8 = vmul.f32 %v92_v6, %v39_v7 }
  0x8b   :  { %v41_v9 = vmul.f32 0.5, %v40_v8 }
  0x8d   :  { %v42_v10 = vsub.f32 1.5, %v41_v9 }
  0x8f   :  { %v43_v11 = vmul.f32 %v92_v6, %v42_v10 }
  0x91   :  { %v44_v12 = vmul.f32 %v43_v11, %v37_v5 }
  0x93   :  { %v46_v14 = vsel %vm45_vm1, %v37_v5, %v44_v12 }
  0x94   :  { %v49_v15 = vsel %vm47_vm2, %v48_v13, %v46_v14 }
  0x95   :  { %v50_v16 = vsub.f32 1.0, %v49_v15 }
  0x97   :  { %v51_v18 = vmax.f32 %v50_v16, 0.0 }
  0x99   :  { %v54_v20 = vmul.f32 %v51_v18, %v51_v18 }
  0x9b   :  { %v55_v22 = vmul.f32 %v54_v20, %v53_v19 }
  0x9d   :  { %v56_v23 = vadd.f32 %v55_v22, %v52_v21 }
  0x9f   :  { %v58_v24 = vsel %vm57_vm3, %v56_v23, 0.0 }
  0xa0   :  { %59 = vadd.xlane.f32.xlu0 %v58_v24 }
 0x113   :  { %v60_v25 = vpop.xlane.xlu0 %59 }
 0x114   :  { %v61_v26 = vrot.slane %v60_v25, 4 }
 0x116   :  { %v62_v27 = vadd.f32 %v61_v26, %v60_v25 }
 0x118   :  { %v63_v28 = vrot.slane %v62_v27, 2 }
 0x11a   :  { %v64_v29 = vadd.f32 %v63_v28, %v62_v27 }
 0x11c   :  { %v65_v30 = vrot.slane %v64_v29, 1 }
 0x11e   :  { %v66_v31 = vadd.f32 %v65_v30, %v64_v29 }
 0x120   :  { %87 = vpush %v66_v31 }
 0x151   :  { %s88_s23 = spop %87 }
 0x152   :  { %v68_v32 = vstv %s88_s23 }
 0x153   :  { %69 = vst [vmem:[#allocation5] sm:$0xff] %v68_v32 }
 0x154   :  { %80 = dma.vmem_to_hbm [thread:$0]  %s76_s20, 128, %s78_s22, [#allocation4]  }
 0x155   :  { %143 = dma.done.wait [#allocation4], 128  }
 0x156   :  { %144 = vsyncadd [#allocation4], 4294967168 }
 0x157   :  { %85 = vsyncpa [#allocation3], 1 }
 0x158   :  { %86 = vsyncpa [#allocation4], 1 }

</bundles_post_ra>
